<compile_context>
chip_gen: v5e
topology: v5e:2x2
jax: 0.10.0
libtpu: 0.0.40
codegen_flags: <defaults>
</compile_context>

<pallas_src>
import jax
import jax.numpy as jnp
from jax.experimental import pallas as pl
from jax.experimental.pallas import tpu as pltpu

_LANE = 128
_SUBLANE = 8


def _round_up(v, m):
    return (v + m - 1) // m * m


def _head_kernel(x_ref, w1_ref, b1_ref, w2_ref, b2_ref, o_ref):
    # x_ref : (TILE_N, Kp)   x's storage dtype (cast to matmul dtype in-kernel)
    # w1_ref: (Kp, Hp)       matmul dtype (bf16 by default)
    # b1_ref: (1, Hp)        f32
    # w2_ref: (Hp, OUTP)     matmul dtype
    # b2_ref: (1, OUTP)      f32
    # o_ref : (TILE_N, OUTP) output dtype
    x = x_ref[...].astype(w1_ref.dtype)         # in-kernel cast: no extra HBM pass
    h = jnp.dot(x, w1_ref[...], preferred_element_type=jnp.float32)
    h = jnp.tanh(h + b1_ref[...])               # bias + tanh in f32 (VPU/EUP)
    out = jnp.dot(h.astype(w2_ref.dtype), w2_ref[...],
                  preferred_element_type=jnp.float32) + b2_ref[...]
    o_ref[...] = out.astype(o_ref.dtype)


def t5_roberta_classification_head(x, w1, b1, w2, b2, *,
                                   compute_dtype=jnp.bfloat16,
                                   out_dtype=None,
                                   tile_n=1024):
    """x: (..., H). w1: (2H, H), b1: (H,), w2: (H, 2), b2: (2,).

    Matches PyTorch `x.reshape(-1, size(-1)*2); dense; tanh; out_proj`.
    compute_dtype: MXU input dtype (bf16 default; f32 for exactness).
    out_dtype: output dtype (defaults to x.dtype; pass bf16 on v5e to halve
    writeback bytes when acceptable).
    """
    hidden = x.shape[-1]
    k = 2 * hidden
    x2 = x.reshape(-1, k)
    n = x2.shape[0]
    out_features = w2.shape[-1]

    cdt = jnp.dtype(compute_dtype)
    odt = jnp.dtype(out_dtype) if out_dtype is not None else x.dtype

    # Lane-dense padded feature sizes.
    kp = _round_up(k, _LANE)
    hp = _round_up(hidden, _LANE)
    outp = _round_up(max(out_features, _LANE), _LANE)

    # Pad x's feature dim only if needed (no-op for H = 768/1024 etc.); never
    # pad rows or cast dtype here -> kernel DMA is the only HBM read of x.
    if kp != k:
        x2 = jnp.pad(x2, ((0, 0), (0, kp - k)))
    # Weight/bias pads are tiny one-time costs. Zero padding is inert:
    # padded K rows of w1 are zero; padded H cols give tanh(0)=0 times zero
    # w2 rows; padded output cols are zero and sliced off.
    w1p = jnp.pad(w1, ((0, kp - k), (0, hp - hidden))).astype(cdt)
    b1p = jnp.pad(jnp.reshape(b1, (1, -1)),
                  ((0, 0), (0, hp - hidden))).astype(jnp.float32)
    w2p = jnp.pad(w2, ((0, hp - hidden), (0, outp - out_features))).astype(cdt)
    b2p = jnp.pad(jnp.reshape(b2, (1, -1)),
                  ((0, 0), (0, outp - out_features))).astype(jnp.float32)

    x_b = jnp.dtype(x2.dtype).itemsize
    c_b = cdt.itemsize
    o_b = odt.itemsize

    # Row tile: multiple of 8 sublanes, and at least 2 grid steps when N
    # allows so the row grid can shard across v7x's two TensorCores.
    tn = min(tile_n, _round_up(max(pl.cdiv(n, 2), 1), _SUBLANE))
    tn = max(_SUBLANE, _round_up(tn, _SUBLANE))

    def _vmem_needed(t):
        return (2 * t * kp * x_b            # double-buffered x tile (storage dtype)
                + t * kp * c_b              # in-kernel bf16 cast of x
                + 2 * kp * hp * c_b         # w1 (2 buffers worst case)
                + 2 * hp * 4                # b1
                + t * hp * 4 + t * hp * c_b  # h (f32) + its bf16 cast
                + 2 * hp * outp * c_b       # w2
                + 2 * outp * 4              # b2
                + t * outp * 4              # f32 pre-cast output
                + 2 * t * outp * o_b)       # double-buffered output tile

    # Keep comfortably below v7x's 64 MiB physical VMEM (compiler headroom).
    _VMEM_CAP = 48 << 20
    while _vmem_needed(tn) > _VMEM_CAP and tn > _SUBLANE:
        tn = max(_SUBLANE, _round_up(tn // 2, _SUBLANE))

    grid = (pl.cdiv(n, tn),)
    n_compute = grid[0] * tn   # includes the (masked, discarded) ragged tail

    cost = pl.CostEstimate(
        flops=2 * n_compute * (kp * hp + hp * outp),
        transcendentals=n_compute * hp,
        bytes_accessed=(n * kp * x_b                          # x read
                        + (kp * hp + hp * outp) * c_b         # weights
                        + (hp + outp) * 4                     # biases
                        + n * outp * o_b),                    # padded writeback
    )

    vmem_limit = int(min(max(_vmem_needed(tn) + (4 << 20), 16 << 20), _VMEM_CAP))

    out_padded = pl.pallas_call(
        _head_kernel,
        out_shape=jax.ShapeDtypeStruct((n, outp), odt),
        grid=grid,
        in_specs=[
            pl.BlockSpec((tn, kp), lambda i: (i, 0)),     # activations: streamed
            pl.BlockSpec((kp, hp), lambda i: (0, 0)),     # w1: resident
            pl.BlockSpec((1, hp), lambda i: (0, 0)),      # b1: resident
            pl.BlockSpec((hp, outp), lambda i: (0, 0)),   # w2: resident
            pl.BlockSpec((1, outp), lambda i: (0, 0)),    # b2: resident
        ],
        out_specs=pl.BlockSpec((tn, outp), lambda i: (i, 0)),
        compiler_params=pltpu.CompilerParams(
            dimension_semantics=("parallel",),
            vmem_limit_bytes=vmem_limit,
        ),
        cost_estimate=cost,
    )(x2, w1p, b1p, w2p, b2p)

    return out_padded[:, :out_features]


if __name__ == "__main__":
    # Small shapes consistent with the module: batch=2, seq=8, hidden=32.
    batch, seq, hidden = 2, 8, 32

    key = jax.random.PRNGKey(0)
    kx, kw1, kb1, kw2, kb2 = jax.random.split(key, 5)

    x = jax.random.normal(kx, (batch, seq, hidden), dtype=jnp.float32)

    # nn.Linear params stored pre-transposed as (in_features, out_features):
    #   dense:    weight (H, 2H), bias (H,) -> w1 (2H, H), b1 (H,)
    #   out_proj: weight (2, H),  bias (2,) -> w2 (H, 2),  b2 (2,)
    w1 = jax.random.normal(kw1, (hidden * 2, hidden), dtype=jnp.float32) * 0.02
    b1 = jax.random.normal(kb1, (hidden,), dtype=jnp.float32) * 0.02
    w2 = jax.random.normal(kw2, (hidden, 2), dtype=jnp.float32) * 0.02
    b2 = jax.random.normal(kb2, (2,), dtype=jnp.float32) * 0.02

    # Pure-JAX reference.
    x2 = x.reshape(-1, hidden * 2)
    ref = jnp.tanh(x2 @ w1 + b1[None, :]) @ w2 + b2[None, :]

    n_rows = batch * seq * hidden // (2 * hidden)

    # Default path: bf16 MXU inputs (native MXU dtype), f32 accumulate/bias/tanh.
    out = t5_roberta_classification_head(x, w1, b1, w2, b2)
    out = jax.block_until_ready(out)
    assert out.shape == (n_rows, 2), out.shape
    assert jnp.allclose(out, ref, atol=2e-2, rtol=2e-2), "bf16 mismatch vs reference"

    # Exact f32 path (multi-pass MXU; for verification).
    out_f32 = t5_roberta_classification_head(
        x, w1, b1, w2, b2, compute_dtype=jnp.float32)
    out_f32 = jax.block_until_ready(out_f32)
    assert out_f32.shape == (n_rows, 2), out_f32.shape
    assert jnp.allclose(out_f32, ref, atol=1e-5, rtol=1e-5), "f32 mismatch vs reference"

    print("KERNEL_OK")
</pallas_src>

<mosaic_0001>
module attributes {stable_mosaic.version = 11 : i64} {
  func.func @_head_kernel(%arg0: i32, %arg1: memref<8x128xf32, #tpu.memory_space<vmem>>, %arg2: memref<128x128xbf16, #tpu.memory_space<vmem>>, %arg3: memref<1x128xf32, #tpu.memory_space<vmem>>, %arg4: memref<128x128xbf16, #tpu.memory_space<vmem>>, %arg5: memref<1x128xf32, #tpu.memory_space<vmem>>, %arg6: memref<8x128xf32, #tpu.memory_space<vmem>>) attributes {dimension_semantics = [#tpu.dimension_semantics<parallel>], iteration_bounds = array<i64: 1>, scalar_prefetch = 0 : i64, scratch_operands = 0 : i64, tpu.core_type = #tpu.core_type<tc>, window_params = [{transform_indices = @transform_0, window_bounds = array<i64: 8, 128>}, {pipeline_mode = #tpu.pipeline_mode<synchronous>, transform_indices = @transform_1, window_bounds = array<i64: 128, 128>}, {pipeline_mode = #tpu.pipeline_mode<synchronous>, transform_indices = @transform_2, window_bounds = array<i64: 1, 128>}, {pipeline_mode = #tpu.pipeline_mode<synchronous>, transform_indices = @transform_3, window_bounds = array<i64: 128, 128>}, {pipeline_mode = #tpu.pipeline_mode<synchronous>, transform_indices = @transform_4, window_bounds = array<i64: 1, 128>}, {transform_indices = @transform_5, window_bounds = array<i64: 8, 128>}]} {
    %c0 = arith.constant 0 : index
    %c0_0 = arith.constant 0 : index
    %0 = vector.load %arg1[%c0, %c0_0] : memref<8x128xf32, #tpu.memory_space<vmem>>, vector<8x128xf32>
    %1 = arith.truncf %0 : vector<8x128xf32> to vector<8x128xbf16>
    %c0_1 = arith.constant 0 : index
    %c0_2 = arith.constant 0 : index
    %2 = vector.load %arg2[%c0_1, %c0_2] : memref<128x128xbf16, #tpu.memory_space<vmem>>, vector<128x128xbf16>
    %cst = arith.constant dense<0.000000e+00> : vector<8x128xf32>
    %3 = tpu.matmul %1, %2, %cst {dimension_numbers = #tpu.dot_dimension_numbers<[1], [0], [0], [1], [0, 0, 1, 1], [], []>} : vector<8x128xbf16>, vector<128x128xbf16>, vector<8x128xf32> -> vector<8x128xf32>
    %c0_3 = arith.constant 0 : index
    %c0_4 = arith.constant 0 : index
    %4 = vector.load %arg3[%c0_3, %c0_4] : memref<1x128xf32, #tpu.memory_space<vmem>>, vector<1x128xf32>
    %5 = vector.broadcast %4 : vector<1x128xf32> to vector<8x128xf32>
    %6 = arith.addf %3, %5 : vector<8x128xf32>
    %7 = math.tanh %6 : vector<8x128xf32>
    %8 = arith.truncf %7 : vector<8x128xf32> to vector<8x128xbf16>
    %c0_5 = arith.constant 0 : index
    %c0_6 = arith.constant 0 : index
    %9 = vector.load %arg4[%c0_5, %c0_6] : memref<128x128xbf16, #tpu.memory_space<vmem>>, vector<128x128xbf16>
    %cst_7 = arith.constant dense<0.000000e+00> : vector<8x128xf32>
    %10 = tpu.matmul %8, %9, %cst_7 {dimension_numbers = #tpu.dot_dimension_numbers<[1], [0], [0], [1], [0, 0, 1, 1], [], []>} : vector<8x128xbf16>, vector<128x128xbf16>, vector<8x128xf32> -> vector<8x128xf32>
    %c0_8 = arith.constant 0 : index
    %c0_9 = arith.constant 0 : index
    %11 = vector.load %arg5[%c0_8, %c0_9] : memref<1x128xf32, #tpu.memory_space<vmem>>, vector<1x128xf32>
    %12 = vector.broadcast %11 : vector<1x128xf32> to vector<8x128xf32>
    %13 = arith.addf %10, %12 : vector<8x128xf32>
    %c0_10 = arith.constant 0 : index
    %c0_11 = arith.constant 0 : index
    %14 = vector.load %arg6[%c0_10, %c0_11] : memref<8x128xf32, #tpu.memory_space<vmem>>, vector<8x128xf32>
    tpu.vector_store %arg6[%c0_10, %c0_11], %13 {strides = array<i32>} : memref<8x128xf32, #tpu.memory_space<vmem>>, vector<8x128xf32>,
    return
  }
  func.func @transform_0(%arg0: i32) -> (i32, i32) {
    %c0_i32 = arith.constant 0 : i32
    %c0_i32_0 = arith.constant 0 : i32
    return %arg0, %c0_i32 : i32, i32
  }
  func.func @transform_1(%arg0: i32) -> (i32, i32) {
    %c0_i32 = arith.constant 0 : i32
    %c0_i32_0 = arith.constant 0 : i32
    %c0_i32_1 = arith.constant 0 : i32
    return %c0_i32, %c0_i32_0 : i32, i32
  }
  func.func @transform_2(%arg0: i32) -> (i32, i32) {
    %c0_i32 = arith.constant 0 : i32
    %c0_i32_0 = arith.constant 0 : i32
    %c0_i32_1 = arith.constant 0 : i32
    return %c0_i32, %c0_i32_0 : i32, i32
  }
  func.func @transform_3(%arg0: i32) -> (i32, i32) {
    %c0_i32 = arith.constant 0 : i32
    %c0_i32_0 = arith.constant 0 : i32
    %c0_i32_1 = arith.constant 0 : i32
    return %c0_i32, %c0_i32_0 : i32, i32
  }
  func.func @transform_4(%arg0: i32) -> (i32, i32) {
    %c0_i32 = arith.constant 0 : i32
    %c0_i32_0 = arith.constant 0 : i32
    %c0_i32_1 = arith.constant 0 : i32
    return %c0_i32, %c0_i32_0 : i32, i32
  }
  func.func @transform_5(%arg0: i32) -> (i32, i32) {
    %c0_i32 = arith.constant 0 : i32
    %c0_i32_0 = arith.constant 0 : i32
    return %arg0, %c0_i32 : i32, i32
  }
}

</mosaic_0001>

<bundles_post_ra>
// kernel: tpu_custom_call.1
= control target key start
LH: loop header
LB: loop body
LE: loop exit
PB: predicated region body
PF: predicated region fallthrough
CT: control target
= control target key end

     0   :  { %10 = vsyncpa [#allocation3], 0  ;;  %s497_s0 = inlined_call_operand.hbm [shape: f32[8,128], index: 0, kind: input, shape index: {}]   ;;  %s498_s1 = inlined_call_operand.hbm [shape: bf16[128,128], index: 1, kind: input, shape index: {}]   ;;  %s499_s2 = inlined_call_operand.vmem [shape: f32[1,128], index: 2, kind: input, shape index: {}]   ;;  %s500_s3 = inlined_call_operand.hbm [shape: bf16[128,128], index: 3, kind: input, shape index: {}]   ;;  %s501_s4 = inlined_call_operand.vmem [shape: f32[1,128], index: 4, kind: input, shape index: {}]   ;;  %s502_s5 = inlined_call_operand.hbm [shape: f32[8,128], index: 5, kind: output, shape index: {}]  }
   0x1   :  { %11 = vsyncpa [#allocation6], 0  ;;  %s28_s20 = sshll.u32 %s498_s1, 4  ;;  %s29_s20 = int_to_ptr.hbm [resolvable:$true] %s28_s20 }
   0x2   :  { %12 = vsyncpa [#allocation4], 0  ;;  %s443_s21 = smov [#allocation5]   ;;  %s18_s25 = sshll.u32 %s497_s0, 4  ;;  %s19_s25 = int_to_ptr.hbm [resolvable:$true] %s18_s25 }
   0x3   :  { %s30_s22 = sshll.u32 %s443_s21, 4  ;;  %s444_s26 = smov 64   ;;  %s31_s22 = int_to_ptr.vmem [resolvable:$true] %s30_s22 }
   0x4   :  { %s445_s27 = smov 4   ;;  %s446_s28 = smov [#allocation2]  }
   0x5   :  { %36 = dma.hbm_to_vmem [thread:$0]  %s29_s20, 1024, %s31_s22, [#allocation6], %s444_s26, %s444_s26, %s445_s27  }
   0x6   :  { %s20_s29 = sshll.u32 %s446_s28, 4  ;;  %s43_s7 = sshll.u32 %s500_s3, 4  ;;  %s21_s29 = int_to_ptr.vmem [resolvable:$true] %s20_s29  ;;  %s44_s7 = int_to_ptr.hbm [resolvable:$true] %s43_s7 }
   0x7   :  { %23 = dma.hbm_to_vmem [thread:$0]  %s19_s25, 128, %s21_s29, [#allocation3]  }
   0x8   :  { %s447_s1 = smov [#allocation7]  }
   0x9   :  { %s45_s8 = sshll.u32 %s447_s1, 4  ;;  %s46_s8 = int_to_ptr.vmem [resolvable:$true] %s45_s8 }
   0xa   :  { %51 = dma.hbm_to_vmem [thread:$0]  %s44_s7, 1024, %s46_s8, [#allocation6], %s444_s26, %s444_s26, %s445_s27  }
   0xb   :  { %437 = dma.done.wait [#allocation3], 128  }
   0xc   :  { %438 = vsyncadd [#allocation3], 4294967168 }
   0xd   :  { %439 = dma.done.wait [#allocation6], 2048  }
   0xe   :  { %440 = vsyncadd [#allocation6], 4294965248  ;;  %v322_v0 = vld [vmem:[#allocation5 + $0x38] sm:$0xff]  ;;  %v321_v1 = vld [vmem:[#allocation5 + $0x30] sm:$0xff]  ;;  %s448_s11 = smov [#allocation8]   ;;  %s240_s15 = sshll.u32 %s502_s5, 4  ;;  %s241_s15 = int_to_ptr.hbm [resolvable:$true] %s240_s15 }
   0xf   :  { %136 = vmatpush.bf16.msra.mxu0 %v322_v0  ;;  %v330_v2 = vld [vmem:[#allocation7 + $0x38] sm:$0xff]  ;;  %v329_v3 = vld [vmem:[#allocation7 + $0x30] sm:$0xff]  ;;  %v320_v4 = vld [vmem:[#allocation5 + $0x28] sm:$0xff]  ;;  %s238_s12 = sshll.u32 %s448_s11, 4  ;;  %s239_s12 = int_to_ptr.vmem [resolvable:$true] %s238_s12 }
  0x10   :  { %219 = vmatpush.bf16.msra.mxu1 %v330_v2  ;;  %v328_v5 = vld [vmem:[#allocation7 + $0x28] sm:$0xff]  ;;  %v319_v6 = vld [vmem:[#allocation5 + $0x20] sm:$0xff]  ;;  %v318_v8 = vld [vmem:[#allocation5 + $0x18] sm:$0xff] }
  0x11   :  { %v327_v7 = vld [vmem:[#allocation7 + $0x20] sm:$0xff]  ;;  %v326_v9 = vld [vmem:[#allocation7 + $0x18] sm:$0xff]  ;;  %v317_v10 = vld [vmem:[#allocation5 + $0x10] sm:$0xff] }
  0x12   :  { %v316_v11 = vld [vmem:[#allocation5 + $0x8] sm:$0xff]  ;;  %v315_v12 = vld [vmem:[#allocation5] sm:$0xff]  ;;  %v66_v13 = vld [vmem:[#allocation2] sm:$0xff] }
  0x13   :  { %137 = vmatpush.bf16.msra.mxu0 %v321_v1  ;;  %v67_v14 = vpack.c.bf16 %v66_v13, %v66_v13  ;;  %v325_v15 = vld [vmem:[#allocation7 + $0x10] sm:$0xff]  ;;  %v324_v16 = vld [vmem:[#allocation7 + $0x8] sm:$0xff]  ;;  %v323_v17 = vld [vmem:[#allocation7] sm:$0xff] }
  0x14   :  { %220 = vmatpush.bf16.msra.mxu1 %v329_v3  ;;  %v337_v18 = vld [vmem:[%s499_s2] ss:$0 sm:$0xff] }
  0x15   :  { %v338_v24 = vld [vmem:[%s501_s4] ss:$0 sm:$0xff] }
  0x17   :  { %138 = vmatpush.bf16.msra.mxu0 %v320_v4 }
  0x18   :  { %221 = vmatpush.bf16.msra.mxu1 %v328_v5 }
  0x1b   :  { %139 = vmatpush.bf16.msra.mxu0 %v319_v6 }
  0x1c   :  { %222 = vmatpush.bf16.msra.mxu1 %v327_v7 }
  0x1f   :  { %140 = vmatpush.bf16.msra.mxu0 %v318_v8 }
  0x20   :  { %223 = vmatpush.bf16.msra.mxu1 %v326_v9 }
  0x23   :  { %141 = vmatpush.bf16.msra.mxu0 %v317_v10 }
  0x24   :  { %224 = vmatpush.bf16.msra.mxu1 %v325_v15 }
  0x27   :  { %142 = vmatpush.bf16.msra.mxu0 %v316_v11 }
  0x28   :  { %225 = vmatpush.bf16.msra.mxu1 %v324_v16 }
  0x2b   :  { %143 = vmatpush.bf16.msra.mxu0 %v315_v12 }
  0x2c   :  { %226 = vmatpush.bf16.msra.mxu1 %v323_v17 }
  0x2e   :  { %144 = vmatmul.bf16.vlgmr.msra.gmra.mxu0 %v67_v14 }
  0xab   :  { %v145_v19 = vpop.f32.mrf.mxu0 }
  0xac   :  { %v146_v20 = vadd.f32 %v337_v18, %v145_v19 }
  0xae   :  { %339 = vtanh.f32 %v146_v20 }
  0xb3   :  { %v147_v21 = vpop.f32.mrf.mxu0 }
  0xb4   :  { %v340_v22 = vpop.eup %339 }
  0xb5   :  { %v150_v23 = vpack.c.bf16 %v340_v22, %v340_v22 }
  0xb7   :  { %227 = vmatmul.bf16.vlgmr.msra.gmra.mxu1 %v150_v23 }
 0x134   :  { %v228_v25 = vpop.f32.mrf.mxu1 }
 0x135   :  { %v229_v26 = vadd.f32 %v338_v24, %v228_v25 }
 0x137   :  { %232 = vst [vmem:[#allocation8] sm:$0xff] %v229_v26 }
 0x138   :  { %243 = dma.vmem_to_hbm [thread:$0]  %s239_s12, 128, %s241_s15, [#allocation4]  }
 0x13c   :  { %v230_v27 = vpop.f32.mrf.mxu1 }
 0x13d   :  { %441 = dma.done.wait [#allocation4], 128  }
 0x13e   :  { %442 = vsyncadd [#allocation4], 4294967168 }
 0x13f   :  { %248 = vsyncpa [#allocation3], 1 }
 0x140   :  { %249 = vsyncpa [#allocation6], 1 }
 0x141   :  { %250 = vsyncpa [#allocation4], 1 }

</bundles_post_ra>
